<compile_context>
chip_gen: v5e
topology: v5e:2x2
jax: 0.10.0
libtpu: 0.0.40
codegen_flags: <defaults>
</compile_context>

<pallas_src>
import functools

import jax
import jax.numpy as jnp
from jax.experimental import pallas as pl
from jax.experimental.pallas import tpu as pltpu

_MIB = 1024 * 1024


# ----------------------------- Pallas kernels ------------------------------ #
def _mrconv_self_kernel(x_ref, idxj_ref, idxi_ref, wx_ref, wr_ref, b_ref, o_ref,
                        *, tn, num_k, compute_dtype, mxu_precision):
    # x_ref   : (1, N, C)  node features (compute_dtype), full-N resident
    # idx*_ref: (1, tn, K) int32, native (B, N, K) layout, tiled on query nodes
    # wx_ref  : (C, Cout_pad)  conv weight acting on x   (even input channels)
    # wr_ref  : (C, Cout_pad)  conv weight acting on x_j (odd  input channels)
    # b_ref   : (1, Cout_pad) f32
    # o_ref   : (1, tn, Cout_pad)
    x = x_ref[0]                                            # (N, C)
    idx_j = idxj_ref[0]                                     # (tn, K)
    idx_i = idxi_ref[0]                                     # (tn, K)
    n = x.shape[0]

    iota_n = jax.lax.broadcasted_iota(jnp.int32, (tn, n), 1)
    iota_k = jax.lax.broadcasted_iota(jnp.int32, (tn, num_k), 1)

    def signed_onehot(j_col, i_col):
        # Compare + cast straight to the MXU input dtype (no f32 detour).
        return ((iota_n == j_col).astype(compute_dtype)
                - (iota_n == i_col).astype(compute_dtype))  # (tn, N)

    # k = 0 peeled (static column) -> initial running max (no -inf init).
    acc0 = jnp.dot(signed_onehot(idx_j[:, 0:1], idx_i[:, 0:1]), x,
                   preferred_element_type=jnp.float32,
                   precision=mxu_precision)                 # (tn, C) f32

    def body(kk, acc):
        # Extract column kk of the (tn, K) index tiles with a tiny masked
        # lane-reduce (robust lowering; avoids dynamic lane slicing).
        mk = iota_k == kk
        j_col = jnp.sum(jnp.where(mk, idx_j, 0), axis=1, keepdims=True)  # (tn, 1)
        i_col = jnp.sum(jnp.where(mk, idx_i, 0), axis=1, keepdims=True)
        diff = jnp.dot(signed_onehot(j_col, i_col), x,
                       preferred_element_type=jnp.float32,
                       precision=mxu_precision)             # (tn, C) f32
        return jnp.maximum(acc, diff)

    xmax = jax.lax.fori_loop(1, num_k, body, acc0)          # (tn, C) f32

    # Fused 1x1 conv as two accumulated dots (no lane-axis concat).
    row0 = pl.multiple_of(pl.program_id(1) * tn, tn)
    x_rows = x_ref[0, pl.ds(row0, tn), :]                   # (tn, C)
    out = (jnp.dot(x_rows, wx_ref[...],
                   preferred_element_type=jnp.float32, precision=mxu_precision)
           + jnp.dot(xmax.astype(compute_dtype), wr_ref[...],
                     preferred_element_type=jnp.float32, precision=mxu_precision)
           + b_ref[...])
    o_ref[0] = jnp.maximum(out, 0.0).astype(o_ref.dtype)


def _mrconv_xy_kernel(x_ref, y_ref, idxj_ref, idxi_ref, wx_ref, wr_ref, b_ref,
                      o_ref, *, tn, num_k, compute_dtype, mxu_precision):
    # Same as above but x_j is gathered from y:  max_k ( y[idx_j] - x[idx_i] ).
    # Two N-wide one-hots / two dots per k instead of one 2N-wide signed one-hot
    # against a concatenated feature.
    x = x_ref[0]                                            # (N, C)
    y = y_ref[0]                                            # (N, C)
    idx_j = idxj_ref[0]                                     # (tn, K)
    idx_i = idxi_ref[0]
    n = x.shape[0]

    iota_n = jax.lax.broadcasted_iota(jnp.int32, (tn, n), 1)
    iota_k = jax.lax.broadcasted_iota(jnp.int32, (tn, num_k), 1)

    def gather_diff(j_col, i_col):
        sel_j = (iota_n == j_col).astype(compute_dtype)     # (tn, N)
        sel_i = (iota_n == i_col).astype(compute_dtype)
        return (jnp.dot(sel_j, y, preferred_element_type=jnp.float32,
                        precision=mxu_precision)
                - jnp.dot(sel_i, x, preferred_element_type=jnp.float32,
                          precision=mxu_precision))         # (tn, C) f32

    acc0 = gather_diff(idx_j[:, 0:1], idx_i[:, 0:1])

    def body(kk, acc):
        mk = iota_k == kk
        j_col = jnp.sum(jnp.where(mk, idx_j, 0), axis=1, keepdims=True)
        i_col = jnp.sum(jnp.where(mk, idx_i, 0), axis=1, keepdims=True)
        return jnp.maximum(acc, gather_diff(j_col, i_col))

    xmax = jax.lax.fori_loop(1, num_k, body, acc0)          # (tn, C) f32

    row0 = pl.multiple_of(pl.program_id(1) * tn, tn)
    x_rows = x_ref[0, pl.ds(row0, tn), :]                   # (tn, C)
    out = (jnp.dot(x_rows, wx_ref[...],
                   preferred_element_type=jnp.float32, precision=mxu_precision)
           + jnp.dot(xmax.astype(compute_dtype), wr_ref[...],
                     preferred_element_type=jnp.float32, precision=mxu_precision)
           + b_ref[...])
    o_ref[0] = jnp.maximum(out, 0.0).astype(o_ref.dtype)


# --------------------------- sizing helpers -------------------------------- #
def _vmem_budgets():
    """Generation-aware (working_budget, vmem_limit) in bytes."""
    try:
        cap = int(pltpu.get_tpu_info().vmem_capacity_bytes)
    except Exception:  # no device / older runtime: assume the small (v7x) budget
        cap = 64 * _MIB
    if cap <= 80 * _MIB:          # v7x-class: 64 MiB per TensorCore
        work = 40 * _MIB
    else:                         # v5e / v6e: 128 MiB
        work = 96 * _MIB
    limit = min(cap, work + 16 * _MIB)
    return work, limit


def _vmem_estimate(tn, n, c, num_k, cpad, cd_bytes, out_bytes, n_resident_feats):
    """Peak VMEM estimate: pipeline buffers + in-kernel live values (K-chunked)."""
    est = 2 * n_resident_feats * n * c * cd_bytes          # x (and y), double-buffered
    est += 2 * 2 * tn * num_k * 4                          # neighbor / center index tiles
    est += 2 * 2 * c * cpad * cd_bytes + 2 * cpad * 4      # W_even, W_odd, bias
    est += 2 * tn * cpad * out_bytes                       # output tile
    est += tn * n * 4                                      # int32 iota over N
    est += tn * n * (8 + 2 * cd_bytes)                     # compare masks + one-hot(s)
    est += 4 * tn * c * 4                                  # diff / running max / x_rows / acc
    return est


def _pick_query_tile(n, num_k, c, cpad, cd_bytes, out_bytes, n_resident_feats,
                     budget, batch):
    cands = [t for t in (1024, 512, 256, 128, 64, 32, 16, 8) if t <= n and n % t == 0]
    if not cands:
        cands = [n]
    if batch == 1:  # keep >= 2 grid programs so both v7x TensorCores get work
        two_prog = [t for t in cands if n // t >= 2]
        if two_prog:
            cands = two_prog
    for t in cands:
        if _vmem_estimate(t, n, c, num_k, cpad, cd_bytes, out_bytes,
                          n_resident_feats) <= budget:
            return t
    return cands[-1]


# ------------------------------ JAX wrapper -------------------------------- #
@functools.partial(jax.jit, static_argnames=("compute_dtype", "out_dtype"))
def mrconv2d_pallas(x_nchw, edge_index, weight, bias, y_nchw=None, *,
                    compute_dtype=jnp.bfloat16, out_dtype=None):
    """x_nchw: (B, C, N, 1); edge_index: (2, B, N, K) int; weight: (Cout, 2C, 1, 1);
       bias: (Cout,).  Returns (B, Cout, N, 1) in `out_dtype` (default: x dtype)."""
    b, c, n, _ = x_nchw.shape
    num_k = edge_index.shape[-1]
    c_out = weight.shape[0]
    cpad = ((c_out + 127) // 128) * 128                   # lane-dense output width
    if out_dtype is None:
        out_dtype = x_nchw.dtype
    cd_bytes = jnp.dtype(compute_dtype).itemsize
    out_bytes = jnp.dtype(out_dtype).itemsize
    mxu_precision = (jax.lax.Precision.HIGHEST
                     if jnp.dtype(compute_dtype) == jnp.dtype(jnp.float32) else None)

    x = jnp.transpose(x_nchw[..., 0], (0, 2, 1)).astype(compute_dtype)   # (B, N, C)
    idx_j = edge_index[0].astype(jnp.int32)               # (B, N, K) native layout
    idx_i = edge_index[1].astype(jnp.int32)

    # Fold the interleaved channel-concat into the 1x1 conv weight:
    #   even input channels act on x, odd ones on the max-relative feature.
    w2 = weight.reshape(c_out, 2 * c).astype(jnp.float32)
    w_x = jnp.pad(jnp.transpose(w2[:, 0::2]),
                  ((0, 0), (0, cpad - c_out))).astype(compute_dtype)     # (C, Cpad)
    w_rel = jnp.pad(jnp.transpose(w2[:, 1::2]),
                    ((0, 0), (0, cpad - c_out))).astype(compute_dtype)   # (C, Cpad)
    b_pad = jnp.pad(bias.astype(jnp.float32), (0, cpad - c_out)).reshape(1, cpad)

    n_resident = 1 if y_nchw is None else 2
    work_budget, vmem_limit = _vmem_budgets()
    tn = _pick_query_tile(n, num_k, c, cpad, cd_bytes, out_bytes,
                          n_resident, work_budget, batch=b)
    grid = (b, n // tn)

    x_spec = pl.BlockSpec((1, n, c), lambda bi, nt: (bi, 0, 0))
    idx_spec = pl.BlockSpec((1, tn, num_k), lambda bi, nt: (bi, nt, 0))
    w_spec = pl.BlockSpec((c, cpad), lambda bi, nt: (0, 0))
    b_spec = pl.BlockSpec((1, cpad), lambda bi, nt: (0, 0))
    out_spec = pl.BlockSpec((1, tn, cpad), lambda bi, nt: (bi, nt, 0))

    if y_nchw is None:
        kernel = functools.partial(_mrconv_self_kernel, tn=tn, num_k=num_k,
                                   compute_dtype=compute_dtype,
                                   mxu_precision=mxu_precision)
        in_specs = [x_spec, idx_spec, idx_spec, w_spec, w_spec, b_spec]
        args = (x, idx_j, idx_i, w_x, w_rel, b_pad)
    else:
        y = jnp.transpose(y_nchw[..., 0], (0, 2, 1)).astype(compute_dtype)
        kernel = functools.partial(_mrconv_xy_kernel, tn=tn, num_k=num_k,
                                   compute_dtype=compute_dtype,
                                   mxu_precision=mxu_precision)
        in_specs = [x_spec, x_spec, idx_spec, idx_spec, w_spec, w_spec, b_spec]
        args = (x, y, idx_j, idx_i, w_x, w_rel, b_pad)

    out = pl.pallas_call(
        kernel,
        out_shape=jax.ShapeDtypeStruct((b, n, cpad), out_dtype),
        grid_spec=pltpu.PrefetchScalarGridSpec(
            num_scalar_prefetch=0,
            grid=grid,
            in_specs=in_specs,
            out_specs=out_spec,
        ),
        compiler_params=pltpu.CompilerParams(
            dimension_semantics=("parallel", "parallel"),
            vmem_limit_bytes=int(vmem_limit)),
    )(*args)

    out = out[..., :c_out]                                  # drop lane padding
    return jnp.transpose(out, (0, 2, 1))[..., None]         # (B, Cout, N, 1)


# -------------------------- Pure-JAX reference ----------------------------- #
def mrconv2d_ref(x_nchw, edge_index, weight, bias, y_nchw=None):
    b, c, n, _ = x_nchw.shape
    c_out = weight.shape[0]
    x = x_nchw[..., 0]                                      # (B, C, N)
    src = x if y_nchw is None else y_nchw[..., 0]
    idx_j = edge_index[0]
    idx_i = edge_index[1]

    def gather_one(feat_b, idx_b):                          # (C,N),(N,K)->(C,N,K)
        return feat_b[:, idx_b]

    x_i = jax.vmap(gather_one)(x, idx_i)                    # (B, C, N, K)
    x_j = jax.vmap(gather_one)(src, idx_j)                  # (B, C, N, K)
    x_j = jnp.max(x_j - x_i, axis=-1)                       # (B, C, N)

    cat = jnp.stack([x, x_j], axis=2).reshape(b, 2 * c, n)  # interleaved channels
    w2 = weight.reshape(c_out, 2 * c)
    out = jnp.einsum('oc,bcn->bon', w2, cat,
                     precision=jax.lax.Precision.HIGHEST) + bias[None, :, None]
    return jnp.maximum(out, 0.0)[..., None]                 # (B, Cout, N, 1)


# ---------------------------------- main ----------------------------------- #
if __name__ == "__main__":
    B, C, N, K, C_OUT = 2, 4, 16, 8, 8

    key = jax.random.PRNGKey(0)
    kx, ky, ke0, ke1, kw, kb = jax.random.split(key, 6)

    x = jax.random.normal(kx, (B, C, N, 1), dtype=jnp.float32)
    y = jax.random.normal(ky, (B, C, N, 1), dtype=jnp.float32)
    edge_index = jnp.stack([
        jax.random.randint(ke0, (B, N, K), 0, N, dtype=jnp.int32),   # neighbor idx
        jax.random.randint(ke1, (B, N, K), 0, N, dtype=jnp.int32),   # center idx
    ], axis=0)                                                       # (2, B, N, K)

    weight = 0.1 * jax.random.normal(kw, (C_OUT, 2 * C, 1, 1), dtype=jnp.float32)
    bias = 0.1 * jax.random.normal(kb, (C_OUT,), dtype=jnp.float32)

    ref = mrconv2d_ref(x, edge_index, weight, bias)
    ref_y = mrconv2d_ref(x, edge_index, weight, bias, y)

    # Higher-precision path (f32 MXU inputs, HIGHEST precision).
    out_f32 = jax.block_until_ready(
        mrconv2d_pallas(x, edge_index, weight, bias, compute_dtype=jnp.float32))
    assert out_f32.shape == (B, C_OUT, N, 1), out_f32.shape
    if not jnp.allclose(out_f32, ref, atol=5e-3, rtol=5e-3):
        raise AssertionError("Pallas MRConv2d (f32 path) does not match reference")

    out_f32_y = jax.block_until_ready(
        mrconv2d_pallas(x, edge_index, weight, bias, y, compute_dtype=jnp.float32))
    if not jnp.allclose(out_f32_y, ref_y, atol=5e-3, rtol=5e-3):
        raise AssertionError("Pallas MRConv2d (f32, y path) does not match reference")

    # Default perf path (bf16 MXU inputs, f32 accumulate) -- bf16-level tolerance.
    out_bf16 = jax.block_until_ready(mrconv2d_pallas(x, edge_index, weight, bias))
    if not jnp.allclose(out_bf16, ref, atol=6e-2, rtol=6e-2):
        raise AssertionError("Pallas MRConv2d (bf16 path) does not match reference")

    print("KERNEL_OK")
</pallas_src>

<mosaic_0001>
module attributes {stable_mosaic.version = 11 : i64} {
  func.func @_mrconv_self_kernel(%arg0: i32, %arg1: i32, %arg2: memref<1x16x4xf32, #tpu.memory_space<vmem>>, %arg3: memref<1x16x8xi32, #tpu.memory_space<vmem>>, %arg4: memref<1x16x8xi32, #tpu.memory_space<vmem>>, %arg5: memref<4x128xf32, #tpu.memory_space<vmem>>, %arg6: memref<4x128xf32, #tpu.memory_space<vmem>>, %arg7: memref<1x128xf32, #tpu.memory_space<vmem>>, %arg8: memref<1x16x128xf32, #tpu.memory_space<vmem>>) attributes {dimension_semantics = [#tpu.dimension_semantics<parallel>, #tpu.dimension_semantics<parallel>], iteration_bounds = array<i64: 2, 1>, scalar_prefetch = 0 : i64, scratch_operands = 0 : i64, tpu.core_type = #tpu.core_type<tc>, window_params = [{transform_indices = @transform_0, window_bounds = array<i64: 1, 16, 4>}, {transform_indices = @transform_1, window_bounds = array<i64: 1, 16, 8>}, {transform_indices = @transform_2, window_bounds = array<i64: 1, 16, 8>}, {pipeline_mode = #tpu.pipeline_mode<synchronous>, transform_indices = @transform_3, window_bounds = array<i64: 4, 128>}, {pipeline_mode = #tpu.pipeline_mode<synchronous>, transform_indices = @transform_4, window_bounds = array<i64: 4, 128>}, {pipeline_mode = #tpu.pipeline_mode<synchronous>, transform_indices = @transform_5, window_bounds = array<i64: 1, 128>}, {transform_indices = @transform_6, window_bounds = array<i64: 1, 16, 128>}]} {
    %c0 = arith.constant 0 : index
    %c0_0 = arith.constant 0 : index
    %c0_1 = arith.constant 0 : index
    %0 = vector.load %arg2[%c0, %c0_0, %c0_1] : memref<1x16x4xf32, #tpu.memory_space<vmem>>, vector<1x16x4xf32>
    %1 = vector.shape_cast %0 : vector<1x16x4xf32> to vector<16x4xf32>
    %c0_2 = arith.constant 0 : index
    %c0_3 = arith.constant 0 : index
    %c0_4 = arith.constant 0 : index
    %2 = vector.load %arg3[%c0_2, %c0_3, %c0_4] : memref<1x16x8xi32, #tpu.memory_space<vmem>>, vector<1x16x8xi32>
    %3 = vector.shape_cast %2 : vector<1x16x8xi32> to vector<16x8xi32>
    %c0_5 = arith.constant 0 : index
    %c0_6 = arith.constant 0 : index
    %c0_7 = arith.constant 0 : index
    %4 = vector.load %arg4[%c0_5, %c0_6, %c0_7] : memref<1x16x8xi32, #tpu.memory_space<vmem>>, vector<1x16x8xi32>
    %5 = vector.shape_cast %4 : vector<1x16x8xi32> to vector<16x8xi32>
    %6 = tpu.iota {dimensions = array<i32: 1>} : vector<16x16xi32>
    %7 = tpu.iota {dimensions = array<i32: 1>} : vector<16x8xi32>
    %8 = vector.extract_strided_slice %3 {offsets = [0, 0], sizes = [16, 1], strides = [1, 1]} : vector<16x8xi32> to vector<16x1xi32>
    %9 = vector.extract_strided_slice %5 {offsets = [0, 0], sizes = [16, 1], strides = [1, 1]} : vector<16x8xi32> to vector<16x1xi32>
    %10 = vector.broadcast %8 : vector<16x1xi32> to vector<16x16xi32>
    %11 = arith.cmpi eq, %6, %10 : vector<16x16xi32>
    %12 = arith.extui %11 : vector<16x16xi1> to vector<16x16xi32>
    %13 = arith.sitofp %12 : vector<16x16xi32> to vector<16x16xf32>
    %14 = vector.broadcast %9 : vector<16x1xi32> to vector<16x16xi32>
    %15 = arith.cmpi eq, %6, %14 : vector<16x16xi32>
    %16 = arith.extui %15 : vector<16x16xi1> to vector<16x16xi32>
    %17 = arith.sitofp %16 : vector<16x16xi32> to vector<16x16xf32>
    %18 = arith.subf %13, %17 : vector<16x16xf32>
    %cst = arith.constant dense<0.000000e+00> : vector<16x4xf32>
    %19 = tpu.matmul %18, %1, %cst {dimension_numbers = #tpu.dot_dimension_numbers<[1], [0], [0], [1], [0, 0, 1, 1], [], []>, precision = #tpu.contract_precision<fp32>} : vector<16x16xf32>, vector<16x4xf32>, vector<16x4xf32> -> vector<16x4xf32>
    %c1_i32 = arith.constant 1 : i32
    %c7_i32 = arith.constant 7 : i32
    %20 = arith.addi %c1_i32, %c7_i32 : i32
    %c1_i32_8 = arith.constant 1 : i32
    %21 = scf.for %arg9 = %c1_i32 to %20 step %c1_i32_8 iter_args(%arg10 = %19) -> (vector<16x4xf32>)  : i32 {
      %40 = vector.broadcast %arg9 : i32 to vector<16x8xi32>
      %41 = arith.cmpi eq, %7, %40 : vector<16x8xi32>
      %c0_i32 = arith.constant 0 : i32
      %42 = vector.broadcast %c0_i32 : i32 to vector<16x8xi32>
      %43 = arith.select %41, %3, %42 : vector<16x8xi1>, vector<16x8xi32>
      %cst_24 = arith.constant dense<0> : vector<16xi32>
      %44 = vector.multi_reduction <add>, %43, %cst_24 [1] : vector<16x8xi32> to vector<16xi32>
      %45 = vector.shape_cast %44 : vector<16xi32> to vector<16x1xi32>
      %c0_i32_25 = arith.constant 0 : i32
      %46 = vector.broadcast %c0_i32_25 : i32 to vector<16x8xi32>
      %47 = arith.select %41, %5, %46 : vector<16x8xi1>, vector<16x8xi32>
      %cst_26 = arith.constant dense<0> : vector<16xi32>
      %48 = vector.multi_reduction <add>, %47, %cst_26 [1] : vector<16x8xi32> to vector<16xi32>
      %49 = vector.shape_cast %48 : vector<16xi32> to vector<16x1xi32>
      %50 = vector.broadcast %45 : vector<16x1xi32> to vector<16x16xi32>
      %51 = arith.cmpi eq, %6, %50 : vector<16x16xi32>
      %52 = arith.extui %51 : vector<16x16xi1> to vector<16x16xi32>
      %53 = arith.sitofp %52 : vector<16x16xi32> to vector<16x16xf32>
      %54 = vector.broadcast %49 : vector<16x1xi32> to vector<16x16xi32>
      %55 = arith.cmpi eq, %6, %54 : vector<16x16xi32>
      %56 = arith.extui %55 : vector<16x16xi1> to vector<16x16xi32>
      %57 = arith.sitofp %56 : vector<16x16xi32> to vector<16x16xf32>
      %58 = arith.subf %53, %57 : vector<16x16xf32>
      %cst_27 = arith.constant dense<0.000000e+00> : vector<16x4xf32>
      %59 = tpu.matmul %58, %1, %cst_27 {dimension_numbers = #tpu.dot_dimension_numbers<[1], [0], [0], [1], [0, 0, 1, 1], [], []>, precision = #tpu.contract_precision<fp32>} : vector<16x16xf32>, vector<16x4xf32>, vector<16x4xf32> -> vector<16x4xf32>
      %60 = arith.maximumf %arg10, %59 : vector<16x4xf32>
      scf.yield %60 : vector<16x4xf32>
    }
    %c7_i32_9 = arith.constant 7 : i32
    %c16_i32 = arith.constant 16 : i32
    %22 = arith.muli %arg1, %c16_i32 : i32
    %23 = tpu.assume_multiple %22, 16 : i32
    %c0_10 = arith.constant 0 : index
    %24 = arith.index_cast %23 : i32 to index
    %c0_11 = arith.constant 0 : index
    %25 = vector.load %arg2[%c0_10, %24, %c0_11] : memref<1x16x4xf32, #tpu.memory_space<vmem>>, vector<1x16x4xf32>
    %26 = vector.shape_cast %25 : vector<1x16x4xf32> to vector<16x4xf32>
    %c0_12 = arith.constant 0 : index
    %c0_13 = arith.constant 0 : index
    %27 = vector.load %arg5[%c0_12, %c0_13] : memref<4x128xf32, #tpu.memory_space<vmem>>, vector<4x128xf32>
    %cst_14 = arith.constant dense<0.000000e+00> : vector<16x128xf32>
    %28 = tpu.matmul %26, %27, %cst_14 {dimension_numbers = #tpu.dot_dimension_numbers<[1], [0], [0], [1], [0, 0, 1, 1], [], []>, precision = #tpu.contract_precision<fp32>} : vector<16x4xf32>, vector<4x128xf32>, vector<16x128xf32> -> vector<16x128xf32>
    %c0_15 = arith.constant 0 : index
    %c0_16 = arith.constant 0 : index
    %29 = vector.load %arg6[%c0_15, %c0_16] : memref<4x128xf32, #tpu.memory_space<vmem>>, vector<4x128xf32>
    %cst_17 = arith.constant dense<0.000000e+00> : vector<16x128xf32>
    %30 = tpu.matmul %21, %29, %cst_17 {dimension_numbers = #tpu.dot_dimension_numbers<[1], [0], [0], [1], [0, 0, 1, 1], [], []>, precision = #tpu.contract_precision<fp32>} : vector<16x4xf32>, vector<4x128xf32>, vector<16x128xf32> -> vector<16x128xf32>
    %31 = arith.addf %28, %30 : vector<16x128xf32>
    %c0_18 = arith.constant 0 : index
    %c0_19 = arith.constant 0 : index
    %32 = vector.load %arg7[%c0_18, %c0_19] : memref<1x128xf32, #tpu.memory_space<vmem>>, vector<1x128xf32>
    %33 = vector.broadcast %32 : vector<1x128xf32> to vector<16x128xf32>
    %34 = arith.addf %31, %33 : vector<16x128xf32>
    %cst_20 = arith.constant 0.000000e+00 : f32
    %35 = vector.broadcast %cst_20 : f32 to vector<16x128xf32>
    %36 = arith.maximumf %34, %35 : vector<16x128xf32>
    %c0_21 = arith.constant 0 : index
    %c0_22 = arith.constant 0 : index
    %c0_23 = arith.constant 0 : index
    %37 = vector.load %arg8[%c0_21, %c0_22, %c0_23] : memref<1x16x128xf32, #tpu.memory_space<vmem>>, vector<1x16x128xf32>
    %38 = vector.shape_cast %37 : vector<1x16x128xf32> to vector<16x128xf32>
    %39 = vector.shape_cast %36 : vector<16x128xf32> to vector<1x16x128xf32>
    tpu.vector_store %arg8[%c0_21, %c0_22, %c0_23], %39 {strides = array<i32>} : memref<1x16x128xf32, #tpu.memory_space<vmem>>, vector<1x16x128xf32>,
    return
  }
  func.func @transform_0(%arg0: i32, %arg1: i32) -> (i32, i32, i32) {
    %c0_i32 = arith.constant 0 : i32
    %c0_i32_0 = arith.constant 0 : i32
    %c0_i32_1 = arith.constant 0 : i32
    return %arg0, %c0_i32, %c0_i32_0 : i32, i32, i32
  }
  func.func @transform_1(%arg0: i32, %arg1: i32) -> (i32, i32, i32) {
    %c0_i32 = arith.constant 0 : i32
    %c0_i32_0 = arith.constant 0 : i32
    return %arg0, %arg1, %c0_i32 : i32, i32, i32
  }
  func.func @transform_2(%arg0: i32, %arg1: i32) -> (i32, i32, i32) {
    %c0_i32 = arith.constant 0 : i32
    %c0_i32_0 = arith.constant 0 : i32
    return %arg0, %arg1, %c0_i32 : i32, i32, i32
  }
  func.func @transform_3(%arg0: i32, %arg1: i32) -> (i32, i32) {
    %c0_i32 = arith.constant 0 : i32
    %c0_i32_0 = arith.constant 0 : i32
    %c0_i32_1 = arith.constant 0 : i32
    return %c0_i32, %c0_i32_0 : i32, i32
  }
  func.func @transform_4(%arg0: i32, %arg1: i32) -> (i32, i32) {
    %c0_i32 = arith.constant 0 : i32
    %c0_i32_0 = arith.constant 0 : i32
    %c0_i32_1 = arith.constant 0 : i32
    return %c0_i32, %c0_i32_0 : i32, i32
  }
  func.func @transform_5(%arg0: i32, %arg1: i32) -> (i32, i32) {
    %c0_i32 = arith.constant 0 : i32
    %c0_i32_0 = arith.constant 0 : i32
    %c0_i32_1 = arith.constant 0 : i32
    return %c0_i32, %c0_i32_0 : i32, i32
  }
  func.func @transform_6(%arg0: i32, %arg1: i32) -> (i32, i32, i32) {
    %c0_i32 = arith.constant 0 : i32
    %c0_i32_0 = arith.constant 0 : i32
    return %arg0, %arg1, %c0_i32 : i32, i32, i32
  }
}

</mosaic_0001>

<bundles_post_ra>
// kernel: mrconv2d_pallas.1
= control target key start
LH: loop header
LB: loop body
LE: loop exit
PB: predicated region body
PF: predicated region fallthrough
CT: control target
= control target key end

     0   :  { %s1552_s21 = smov 0   ;;  %s1554_s22 = smov 0   ;;  %s1742_s0 = inlined_call_operand.vmem [shape: f32[2,16,4], index: 0, kind: input, shape index: {}]   ;;  %s1743_s1 = inlined_call_operand.vmem [shape: s32[2,16,8], index: 1, kind: input, shape index: {}]   ;;  %s1744_s2 = inlined_call_operand.vmem [shape: s32[2,16,8], index: 2, kind: input, shape index: {}]   ;;  %s1745_s3 = inlined_call_operand.vmem [shape: f32[4,128], index: 3, kind: input, shape index: {}]   ;;  %s1746_s4 = inlined_call_operand.vmem [shape: f32[4,128], index: 4, kind: input, shape index: {}]   ;;  %s1747_s5 = inlined_call_operand.vmem [shape: f32[1,128], index: 5, kind: input, shape index: {}]   ;;  %s1748_s6 = inlined_call_operand.vmem [shape: f32[2,16,128], index: 6, kind: output, shape index: {}]  }
   0x1   :  { %s1556_s23 = smov 0  }
   0x2 LB: > { %s28_s24 = sadd.s32 1, %s1496_s22  ;;  %p1381_p0 = scmp.ge.s32.totalorder %s1500_s23, 1  ;;  %s1500_s23 = sphi %s1556_s23, %s16_s23   ;;  %s1496_s22 = sphi %s1554_s22, %s1754_s22   ;;  %s1492_s21 = sphi %s1552_s21, %s1753_s21  }
   0x3   : > { %p30_p1 = scmp.ge.s32.totalorder %s28_s24, 2  ;;  %p260_p2 = scmp.lt.s32.totalorder %s1500_s23, 3 }
   0x5   : > { %s1756_s24 = smov (%p30_p1, %s28_s24), 0  ;;  %p261_p3 = pnand %p1381_p0, %p260_p2 }
   0x6   : > { %p312_p4 = scmp.lt.s32.totalorder (!%p261_p3), %s1492_s21, 1  ;;  %s1652_s14 = smov (!%p261_p3), 1  }
   0x7   : > { %264 = sbr.rel (%p261_p3) target bundleno = 802 (0x322), region = 44 }
   0xc   : > { %v1514_v0 = vmov 0   ;;  %s1758_s21 = smov (!%p312_p4, %s1492_s21), 1  ;;  %v353_v17 = vlaneseq  ;;  %v1515_v21 = vmov 0.0   ;;  %vm381_vm4 = vcmask 130048  }
   0xd   : > { %1464 = vset.pattern.permute.xlu1 %v1514_v0  ;;  %1463 = vset.pattern.permute.xlu0 %v1514_v0  ;;  %s1400_s25 = sshll.u32 %s1758_s21, 4 }
   0xe   : > { %s325_s28 = scalar_lea.vmem %s1743_s1, %s1400_s25  ;;  %s1576_s7 = scalar_lea.vmem %s1748_s6, %s1400_s25  ;;  %v1640_v20 = vand.u32 127, %v353_v17 }
   0xf   : > { %v1578_v1 = vld [vmem:[%s325_s28 + $0x8] sm:$0xff]  ;;  %v1580_v2 = vld [vmem:[%s325_s28] sm:$0xff]  ;;  %s335_s10 = scalar_lea.vmem %s1744_s2, %s1400_s25  ;;  %s1596_s13 = scalar_lea.vmem %s1742_s0, %s1400_s25 }
  0x10   : > { %359 = vperm.xlu0 %1463, %v1578_v1   ;;  %356 = vperm.xlu1 %1464, %v1580_v2   ;;  %v1587_v3 = vld [vmem:[%s335_s10 + $0x8] sm:$0xff]  ;;  %v1589_v4 = vld [vmem:[%s335_s10] sm:$0xff] }
  0x11   : > { %v348_v5 = vld [vmem:[%s1596_s13 + $0x8] sm:$0xff]  ;;  %v347_v7 = vld [vmem:[%s1596_s13] sm:$0xff] }
  0x12   : > { %v1599_v6 = vand.u32 4294901760, %v348_v5  ;;  %v1605_v9 = vand.u32 4294901760, %v347_v7 }
  0x14   : > { %v1603_v8 = vsub.f32 %v348_v5, %v1599_v6  ;;  %403 = vmatpush.msra.mxu0 %v1599_v6  ;;  %1404 = vmatpush.msra.mxu2 %v1599_v6  ;;  %v1613_v11 = vsub.f32 %v347_v7, %v1605_v9 }
  0x16   : > { %v1610_v10 = vand.u32 4294901760, %v1603_v8  ;;  %405 = vmatpush.msra.mxu0 %v1605_v9  ;;  %1405 = vmatpush.msra.mxu2 %v1605_v9  ;;  %v1621_v13 = vand.u32 4294901760, %v1613_v11 }
  0x18   : > { %371 = vperm.xlu0 %1463, %v1587_v3   ;;  %368 = vperm.xlu1 %1464, %v1589_v4   ;;  %v440_v12 = vsub.f32 %v1603_v8, %v1610_v10  ;;  %v446_v15 = vsub.f32 %v1613_v11, %v1621_v13 }
  0x19   : > { %474 = vmatpush.msrb.mxu2 %v1603_v8  ;;  %537 = vmatpush.msrb.mxu0 %v1610_v10 }
  0x1a   : > { %v1625_v14 = vand.u32 4294901760, %v440_v12  ;;  %v1632_v16 = vand.u32 4294901760, %v446_v15 }
  0x1b   : > { %477 = vmatpush.msrb.mxu2 %v1613_v11  ;;  %541 = vmatpush.msrb.mxu0 %v1621_v13 }
  0x1c   : > { %442 = vmatpush.msra.mxu1 %v1625_v14  ;;  %1406 = vmatpush.msra.mxu3 %v1625_v14 }
  0x1e   : > { %448 = vmatpush.msra.mxu1 %v1632_v16  ;;  %1407 = vmatpush.msra.mxu3 %v1632_v16 }
  0x20   : > { %504 = vmatpush.msrb.mxu3 %v1599_v6  ;;  %566 = vmatpush.msrb.mxu1 %v1599_v6 }
  0x22   : > { %506 = vmatpush.msrb.mxu3 %v1605_v9  ;;  %568 = vmatpush.msrb.mxu1 %v1605_v9 }
  0x82   : > { %v360_v18 = vpop.permute.xlu0 %359  ;;  %v357_v19 = vpop.permute.xlu1 %356 }
  0x83   : > { %vm361_vm0 = vcmp.eq.s32.totalorder %v1640_v20, %v357_v19  ;;  %vm362_vm1 = vcmp.eq.s32.totalorder %v1640_v20, %v360_v18 }
  0x84   : > { %v1390_v22 = vsel %vm361_vm0, 1.0, %v1515_v21  ;;  %v1391_v25 = vsel %vm362_vm1, 1.0, %v1515_v21 }
  0x8a   : > { %v372_v23 = vpop.permute.xlu0 %371  ;;  %v369_v24 = vpop.permute.xlu1 %368 }
  0x8b   : > { %vm374_vm2 = vcmp.eq.s32.totalorder %v1640_v20, %v372_v23  ;;  %vm373_vm3 = vcmp.eq.s32.totalorder %v1640_v20, %v369_v24 }
  0x8c   : > { %v1393_v26 = vsel %vm374_vm2, 1.0, %v1515_v21  ;;  %v1392_v27 = vsel %vm373_vm3, 1.0, %v1515_v21 }
  0x8d   : > { %v380_v28 = vsub.f32 %v1391_v25, %v1393_v26  ;;  %v379_v29 = vsub.f32 %v1390_v22, %v1392_v27 }
  0x8f   : > { %v386_v30 = vsel %vm381_vm4, %v380_v28, 0  ;;  %v383_v31 = vsel %vm381_vm4, %v379_v29, 0 }
  0x90   : > { %v414_v32 = vand.u32 4294901760, %v386_v30  ;;  %v406_v33 = vand.u32 4294901760, %v383_v31 }
  0x92   : > { %v415_v34 = vsub.f32 %v386_v30, %v414_v32  ;;  %v407_v35 = vsub.f32 %v383_v31, %v406_v33  ;;  %450 = vmatmul.f32.vlgmr.msra.gmra.mxu1 %v406_v33  ;;  %454 = vmatmul.f32.vlgmr.msra.gmra.mxu3 %v414_v32 }
  0x94   : > { %v408_v36 = vand.u32 4294901760, %v407_v35  ;;  %v416_v37 = vand.u32 4294901760, %v415_v34 }
  0x96   : > { %v409_v38 = vsub.f32 %v407_v35, %v408_v36  ;;  %v417_v39 = vsub.f32 %v415_v34, %v416_v37 }
  0x98   : > { %v410_v40 = vand.u32 4294901760, %v409_v38  ;;  %v418_v41 = vand.u32 4294901760, %v417_v39 }
  0x9a   : > { %411 = vmatmul.f32.vlgmr.msra.gmra.mxu0 %v410_v40  ;;  %419 = vmatmul.f32.vlgmr.msra.gmra.mxu2 %v418_v41 }
  0x9b   : > { %510 = vmatmul.f32.vlgmr.msrb.gmra.mxu3 %v408_v36  ;;  %570 = vmatmul.f32.vlgmr.msrb.gmra.mxu1 %v406_v33 }
  0xa2   : > { %480 = vmatmul.f32.vlgmr.msrb.gmra.mxu2 %v407_v35  ;;  %543 = vmatmul.f32.vlgmr.msrb.gmra.mxu0 %v406_v33 }
  0xa3   : > { %516 = vmatmul.f32.gmra.mxu3 %v416_v37  ;;  %574 = vmatmul.f32.gmra.mxu1 %v414_v32 }
  0xaa   : > { %485 = vmatmul.f32.gmra.mxu2 %v415_v34  ;;  %547 = vmatmul.f32.gmra.mxu0 %v414_v32 }
 0x10f   : > { %v451_v45 = vpop.f32.mrf.mxu1 }
 0x115   : > { %v455_v42 = vpop.f32.mrf.mxu3 }
 0x117   : > { %v412_v43 = vpop.f32.mrf.mxu0 }
 0x118   : > { %v452_v46 = vadd.f32 %v451_v45, %v412_v43  ;;  %v571_v52 = vpop.f32.mrf.mxu1 }
 0x11d   : > { %v420_v44 = vpop.f32.mrf.mxu2 }
 0x11e   : > { %v511_v47 = vpop.f32.mrf.mxu3  ;;  %v456_v54 = vadd.f32 %v455_v42, %v420_v44 }
 0x11f   : > { %v544_v50 = vpop.f32.mrf.mxu0 }
 0x120   : > { %v575_v62 = vpop.f32.mrf.mxu1 }
 0x125   : > { %v481_v48 = vpop.f32.mrf.mxu2 }
 0x126   : > { %v482_v49 = vadd.f32 %v481_v48, %v452_v46  ;;  %v517_v58 = vpop.f32.mrf.mxu3 }
 0x127   : > { %v548_v60 = vpop.f32.mrf.mxu0 }
 0x128   : > { %v512_v51 = vadd.f32 %v511_v47, %v482_v49 }
 0x12a   : > { %v545_v53 = vadd.f32 %v544_v50, %v512_v51 }
 0x12c   : > { %v572_v55 = vadd.f32 %v571_v52, %v545_v53  }
 0x12d   : > { %v486_v56 = vpop.f32.mrf.mxu2 }
 0x12e   : > { %v487_v57 = vadd.f32 %v486_v56, %v456_v54 }
 0x130   : > { %v518_v59 = vadd.f32 %v517_v58, %v487_v57 }
 0x132   : > { %v549_v61 = vadd.f32 %v548_v60, %v518_v59 }
 0x134   : > { %v576_v63 = vadd.f32 %v575_v62, %v549_v61  }
 0x135 LB: >> { %1410 = vmatpush.msra.mxu3 %v1625_v14  ;;  %719 = vmatpush.msra.mxu1 %v1625_v14  ;;  %v586_v0 = vstv %s1512_s14  ;;  %vm590_vm5 = vcmask 64512   ;;  %v1516_v57 = vmov 0.0   ;;  %s583_s14 = sadd.s32 1, %s1512_s14   ;;  %s1512_s14 = sphi %s1652_s14, %s583_s14   ;;  %v1508_v55 = vphi %v572_v55, %v1752_v55   ;;  %v1504_v63 = vphi %v576_v63, %v1751_v63  }
 0x136   : >> { %1408 = vmatpush.msra.mxu2 %v1599_v6  ;;  %680 = vmatpush.msra.mxu0 %v1599_v6  ;;  %vm1671_vm6 = vcmp.eq.s32.totalorder %v1640_v20, %v586_v0  ;;  %p580_p5 = scmp.ge.s32.totalorder %s583_s14, 8  }
 0x137   : >> { %1411 = vmatpush.msra.mxu3 %v1632_v16  ;;  %725 = vmatpush.msra.mxu1 %v1632_v16  ;;  %v589_v7 = vsel %vm1671_vm6, %v1578_v1, 0  ;;  %v588_v12 = vsel %vm1671_vm6, %v1580_v2, 0  ;;  %v618_v15 = vsel %vm1671_vm6, %v1587_v3, 0  ;;  %v617_v19 = vsel %vm1671_vm6, %v1589_v4, 0 }
 0x138   : >> { %1409 = vmatpush.msra.mxu2 %v1605_v9  ;;  %v604_v17 = vsel %vm590_vm5, %v589_v7, 0  ;;  %v591_v18 = vsel %vm590_vm5, %v588_v12, 0  ;;  %682 = vmatpush.msra.mxu0 %v1605_v9  ;;  %v632_v24 = vsel %vm590_vm5, %v618_v15, 0  ;;  %v619_v28 = vsel %vm590_vm5, %v617_v19, 0 }
 0x139   : >> { %781 = vmatpush.msrb.mxu3 %v1599_v6  ;;  %843 = vmatpush.msrb.mxu1 %v1599_v6  ;;  %v606_v21 = vshrl.u32 %v604_v17, 16  ;;  %v605_v22 = vand.u32 65535, %v604_v17  ;;  %v593_v23 = vshrl.u32 %v591_v18, 16  ;;  %v634_v29 = vshrl.u32 %v632_v24, 16 }
 0x13a   : >> { %751 = vmatpush.msrb.mxu2 %v1603_v8  ;;  %814 = vmatpush.msrb.mxu0 %v1610_v10  ;;  %v633_v30 = vand.u32 65535, %v632_v24  ;;  %v621_v31 = vshrl.u32 %v619_v28, 16  ;;  %v620_v35 = vand.u32 65535, %v619_v28  ;;  %v592_v36 = vand.u32 65535, %v591_v18 }
 0x13b   : >> { %783 = vmatpush.msrb.mxu3 %v1605_v9  ;;  %845 = vmatpush.msrb.mxu1 %v1605_v9  ;;  %v608_v25 = vcvt.s32.f32 %v606_v21  ;;  %v607_v26 = vcvt.s32.f32 %v605_v22  ;;  %v595_v27 = vcvt.s32.f32 %v593_v23  ;;  %v636_v32 = vcvt.s32.f32 %v634_v29 }
 0x13c   : >> { %754 = vmatpush.msrb.mxu2 %v1613_v11  ;;  %818 = vmatpush.msrb.mxu0 %v1621_v13  ;;  %v635_v33 = vcvt.s32.f32 %v633_v30  ;;  %v623_v34 = vcvt.s32.f32 %v621_v31  ;;  %v622_v37 = vcvt.s32.f32 %v620_v35  ;;  %v594_v38 = vcvt.s32.f32 %v592_v36  ;;  %v860_v11 = vld [vmem:[%s1596_s13 + $0x8] sm:$0xff] (%p580_p5) }
 0x13d   : >> { %611 = vadd.xlane.f32.xlu0 %v608_v25  ;;  %609 = vadd.xlane.f32.xlu1 %v607_v26  ;;  %vm870_vm11 = vcmask (%p580_p5), 1043456   ;;  %vm863_vm12 = vcmask (%p580_p5), 31744  }
 0x13e   : >> { %598 = vadd.xlane.f32.xlu2 %v595_v27 }
 0x145   : >> { %639 = vadd.xlane.f32.xlu0 %v636_v32  ;;  %637 = vadd.xlane.f32.xlu1 %v635_v33 }
 0x146   : >> { %626 = vadd.xlane.f32.xlu2 %v623_v34 }
 0x14d   : >> { %624 = vadd.xlane.f32.xlu1 %v622_v37  ;;  %596 = vadd.xlane.f32.xlu0 %v594_v38 }
 0x1b0   : >> { %v612_v39 = vpop.xlane.xlu0 %611  ;;  %v610_v40 = vpop.xlane.xlu1 %609 }
 0x1b1   : >> { %v614_v41 = vcvt.f32.s32 %v612_v39  ;;  %v599_v42 = vpop.xlane.xlu2 %598  ;;  %v613_v44 = vcvt.f32.s32 %v610_v40 }
 0x1b2   : >> { %v601_v53 = vcvt.f32.s32 %v599_v42 }
 0x1b3   : >> { %v615_v43 = vshll.u32 %v614_v41, 16 }
 0x1b4   : >> { %v602_v62 = vshll.u32 %v601_v53, 16 }
 0x1b5   : >> { %v616_v47 = vadd.s32 %v615_v43, %v613_v44 }
 0x1b7   : >> { %vm646_vm7 = vcmp.eq.s32.totalorder %v1640_v20, %v616_v47 }
 0x1b8   : >> { %v640_v45 = vpop.xlane.xlu0 %639  ;;  %v638_v46 = vpop.xlane.xlu1 %637  ;;  %v1395_v58 = vsel %vm646_vm7, 1.0, %v1516_v57 }
 0x1b9   : >> { %v642_v48 = vcvt.f32.s32 %v640_v45  ;;  %v641_v49 = vcvt.f32.s32 %v638_v46  ;;  %v627_v50 = vpop.xlane.xlu2 %626 }
 0x1ba   : >> { %v629_v52 = vcvt.f32.s32 %v627_v50 }
 0x1bb   : >> { %v643_v51 = vshll.u32 %v642_v48, 16 }
 0x1bc   : >> { %v630_v56 = vshll.u32 %v629_v52, 16 }
 0x1bd   : >> { %v644_v54 = vadd.s32 %v643_v51, %v641_v49 }
 0x1bf   : >> { %vm652_vm8 = vcmp.eq.s32.totalorder %v1640_v20, %v644_v54 }
 0x1c0   : >> { %v1397_v59 = vsel %vm652_vm8, 1.0, %v1516_v57  ;;  %v625_v60 = vpop.xlane.xlu1 %624  ;;  %v597_v61 = vpop.xlane.xlu0 %596 }
 0x1c1   : >> { %v658_v0 = vsub.f32 %v1395_v58, %v1397_v59  ;;  %v628_v5 = vcvt.f32.s32 %v625_v60  ;;  %v600_v7 = vcvt.f32.s32 %v597_v61  ;;  %v862_v58 = vld [vmem:[%s1746_s4] sm:$0xf] (%p580_p5) }
 0x1c2   : > { %v872_v59 = vsel (%p580_p5), %vm870_vm11, %v862_v58, 0 }
 0x1c3   : >> { %v663_v12 = vsel %vm381_vm4, %v658_v0, 0  ;;  %v631_v15 = vadd.s32 %v630_v56, %v628_v5  ;;  %v603_v17 = vadd.s32 %v602_v62, %v600_v7  ;;  %v859_v0 = vld [vmem:[%s1596_s13] sm:$0xff] (%p580_p5)  ;;  %v889_v5 = vand.u32 (%p580_p5), 4294901760, %v872_v59 }
 0x1c4   : >> { %v691_v18 = vand.u32 4294901760, %v663_v12  ;;  %v1052_v4 = vsel (%p580_p5), %vm863_vm12, %v859_v0, 0  ;;  %v1055_v7 = vsel (%p580_p5), %vm863_vm12, %v860_v11, 0 }
 0x1c5   : >> { %vm651_vm9 = vcmp.eq.s32.totalorder %v1640_v20, %v631_v15  ;;  %vm645_vm10 = vcmp.eq.s32.totalorder %v1640_v20, %v603_v17  ;;  %v924_v6 = vsub.f32 (%p580_p5), %v872_v59, %v889_v5  ;;  %v1077_v10 = vand.u32 (%p580_p5), 4294901760, %v1052_v4 }
 0x1c6   : >> { %v1396_v19 = vsel %vm651_vm9, 1.0, %v1516_v57  ;;  %v1394_v21 = vsel %vm645_vm10, 1.0, %v1516_v57  ;;  %731 = vmatmul.f32.vlgmr.msra.gmra.mxu3 %v691_v18  ;;  %v692_v22 = vsub.f32 %v663_v12, %v691_v18 }
 0x1c7   : >> { %v657_v23 = vsub.f32 %v1394_v21, %v1396_v19  ;;  %983 = vmatpush.msra.mxu3 (%p580_p5), %v889_v5  ;;  %v925_v16 = vand.u32 (%p580_p5), 4294901760, %v924_v6 }
 0x1c8   : >> { %v693_v24 = vand.u32 4294901760, %v692_v22 }
 0x1c9   : >> { %v660_v25 = vsel %vm381_vm4, %v657_v23, 0  ;;  %v926_v15 = vsub.f32 (%p580_p5), %v924_v6, %v925_v16 }
 0x1ca   : >> { %v683_v26 = vand.u32 4294901760, %v660_v25  ;;  %v694_v27 = vsub.f32 %v692_v22, %v693_v24 }
 0x1cb   : > { %v927_v21 = vand.u32 (%p580_p5), 4294901760, %v926_v15 }
 0x1cc   : >> { %v684_v28 = vsub.f32 %v660_v25, %v683_v26  ;;  %727 = vmatmul.f32.vlgmr.msra.gmra.mxu1 %v683_v26  ;;  %v695_v29 = vand.u32 4294901760, %v694_v27 }
 0x1cd   : > { %928 = vmatpush.msra.mxu1 (%p580_p5), %v927_v21 }
 0x1ce   : >> { %696 = vmatmul.f32.vlgmr.msra.gmra.mxu2 %v695_v29  ;;  %v685_v30 = vand.u32 4294901760, %v684_v28 }
 0x1cf   : > { %955 = vmatpush.msra.mxu2 (%p580_p5), %v924_v6  ;;  %v1465_v6 = vld [vmem:[%s1747_s5] ss:$0 sm:$0xff] (%p580_p5) }
 0x1d0   : >> { %787 = vmatmul.f32.vlgmr.msrb.gmra.mxu3 %v685_v30  ;;  %v686_v31 = vsub.f32 %v684_v28, %v685_v30 }
 0x1d2   : >> { %v687_v32 = vand.u32 4294901760, %v686_v31 }
 0x1d4   : >> { %688 = vmatmul.f32.vlgmr.msra.gmra.mxu0 %v687_v32  ;;  %847 = vmatmul.f32.vlgmr.msrb.gmra.mxu1 %v683_v26 }
 0x1d5   : > { %890 = vmatpush.msra.mxu0 (%p580_p5), %v889_v5  ;;  %1041 = vmatpush.msrb.mxu1 (%p580_p5), %v889_v5 }
 0x1d6   : >> { %757 = vmatmul.f32.vlgmr.msrb.gmra.mxu2 %v684_v28 }
 0x1d8   : >> { %793 = vmatmul.f32.gmra.mxu3 %v693_v24  ;;  %v1085_v24 = vand.u32 (%p580_p5), 4294901760, %v1055_v7 }
 0x1da   : > { %v1086_v27 = vsub.f32 (%p580_p5), %v1055_v7, %v1085_v24 }
 0x1dc   : >> { %820 = vmatmul.f32.vlgmr.msrb.gmra.mxu0 %v683_v26  ;;  %851 = vmatmul.f32.gmra.mxu1 %v691_v18  ;;  %v1087_v30 = vand.u32 (%p580_p5), 4294901760, %v1086_v27 }
 0x1dd   : > { %1015 = vmatpush.msrb.mxu0 (%p580_p5), %v925_v16 }
 0x1de   : >> { %762 = vmatmul.f32.gmra.mxu2 %v692_v22  ;;  %v1088_v31 = vsub.f32 (%p580_p5), %v1086_v27, %v1087_v30 }
 0x1e0   : > { %v1089_v32 = vand.u32 (%p580_p5), 4294901760, %v1088_v31 }
 0x1e4   : >> { %824 = vmatmul.f32.gmra.mxu0 %v691_v18 }
 0x249   : >> { %v732_v33 = vpop.f32.mrf.mxu3  ;;  %v728_v36 = vpop.f32.mrf.mxu1 }
 0x251   : >> { %v689_v34 = vpop.f32.mrf.mxu0  ;;  %v697_v35 = vpop.f32.mrf.mxu2 }
 0x252   : >> { %v729_v37 = vadd.f32 %v728_v36, %v689_v34  ;;  %v848_v43 = vpop.f32.mrf.mxu1  ;;  %v733_v45 = vadd.f32 %v732_v33, %v697_v35 }
 0x253   : >> { %v788_v38 = vpop.f32.mrf.mxu3 }
 0x259   : >> { %v758_v39 = vpop.f32.mrf.mxu2  ;;  %v821_v41 = vpop.f32.mrf.mxu0 }
 0x25a   : >> { %v759_v40 = vadd.f32 %v758_v39, %v729_v37  ;;  %v852_v54 = vpop.f32.mrf.mxu1 }
 0x25b   : >> { %v794_v50 = vpop.f32.mrf.mxu3 }
 0x25c   : >> { %v789_v42 = vadd.f32 %v788_v38, %v759_v40 }
 0x25e   : >> { %v822_v44 = vadd.f32 %v821_v41, %v789_v42 }
 0x260   : >> { %v849_v46 = vadd.f32 %v848_v43, %v822_v44 }
 0x261   : >> { %v763_v47 = vpop.f32.mrf.mxu2  ;;  %v825_v52 = vpop.f32.mrf.mxu0 }
 0x262   : >> { %v855_v48 = vmax.f32 %v1508_v55, %v849_v46   ;;  %v764_v49 = vadd.f32 %v763_v47, %v733_v45 }
 0x264   : >> { %v795_v51 = vadd.f32 %v794_v50, %v764_v49  ;;  %v1752_v55 = vmov %v855_v48  ;;  %v865_v61 = vsel (%p580_p5), %vm863_vm12, %v855_v48, 0 }
 0x265   : > { %v861_v55 = vld [vmem:[%s1745_s3] sm:$0xf] (%p580_p5)  ;;  %v891_v1 = vand.u32 (%p580_p5), 4294901760, %v865_v61 }
 0x266   : >> { %v826_v53 = vadd.f32 %v825_v52, %v795_v51  ;;  %v1058_v60 = vsel (%p580_p5), %vm870_vm11, %v861_v55, 0 }
 0x267   : > { %v1075_v2 = vand.u32 (%p580_p5), 4294901760, %v1058_v60  ;;  %v892_v8 = vsub.f32 (%p580_p5), %v865_v61, %v891_v1  ;;  %930 = vmatmul.f32.vlgmr.msra.gmra.mxu1 (%p580_p5), %v891_v1 }
 0x268   : >> { %v853_v56 = vadd.f32 %v852_v54, %v826_v53  ;;  %582 = sbr.rel (!%p580_p5) target bundleno = 309 (0x135), region = 88 }
 0x269   : > { %v1110_v9 = vsub.f32 (%p580_p5), %v1058_v60, %v1075_v2  ;;  %v893_v14 = vand.u32 (%p580_p5), 4294901760, %v892_v8  ;;  %958 = vmatmul.f32.vlgmr.msra.gmra.mxu2 (%p580_p5), %v892_v8  ;;  %1169 = vmatpush.msra.mxu1 (%p580_p5), %v1075_v2 }
 0x26a   : >> { %v856_v57 = vmax.f32 %v1504_v63, %v853_v56   ;;  %1076 = vmatpush.msrb.mxu2 (%p580_p5), %v1075_v2 }
 0x26b   : > { %v1111_v20 = vand.u32 (%p580_p5), 4294901760, %v1110_v9  ;;  %987 = vmatmul.f32.vlgmr.msra.gmra.mxu3 (%p580_p5), %v893_v14  ;;  %v894_v12 = vsub.f32 (%p580_p5), %v892_v8, %v893_v14 }
 0x26c   : >> { %v1751_v63 = vmov %v856_v57  ;;  %v868_v62 = vsel (%p580_p5), %vm863_vm12, %v856_v57, 0 }
 0x26d   : > { %v899_v3 = vand.u32 4294901760, %v868_v62  ;;  %v1078_v63 = vsub.f32 %v1052_v4, %v1077_v10  ;;  %v1112_v17 = vsub.f32 %v1110_v9, %v1111_v20  ;;  %1201 = vmatpush.msra.mxu2 %v1111_v20  ;;  %v895_v19 = vand.u32 4294901760, %v894_v12 }
 0x26f   : > { %v900_v13 = vsub.f32 %v868_v62, %v899_v3  ;;  %v1113_v22 = vand.u32 4294901760, %v1112_v17  ;;  %v1079_v23 = vand.u32 4294901760, %v1078_v63  ;;  %896 = vmatmul.f32.vlgmr.msra.gmra.mxu0 %v895_v19  ;;  %934 = vmatmul.f32.gmra.mxu1 %v899_v3 }
 0x270   : > { %1141 = vmatpush.msra.mxu0 %v1110_v9 }
 0x271   : > { %v901_v18 = vand.u32 4294901760, %v900_v13  ;;  %1114 = vmatpush.msrb.mxu3 %v1113_v22  ;;  %963 = vmatmul.f32.gmra.mxu2 %v900_v13  ;;  %v1080_v26 = vsub.f32 %v1078_v63, %v1079_v23 }
 0x273   : > { %v902_v25 = vsub.f32 %v900_v13, %v901_v18  ;;  %1227 = vmatpush.msra.mxu3 %v1075_v2  ;;  %v1081_v29 = vand.u32 4294901760, %v1080_v26 }
 0x274   : > { %993 = vmatmul.f32.gmra.mxu3 %v901_v18 }
 0x275   : > { %v903_v28 = vand.u32 4294901760, %v902_v25 }
 0x277   : > { %904 = vmatmul.f32.gmra.mxu0 %v903_v28  ;;  %1043 = vmatmul.f32.vlgmr.msrb.gmra.mxu1 %v891_v1 }
 0x279   : > { %1082 = vmatmul.f32.vlgmr.msrb.gmra.mxu2 %v1081_v29 }
 0x27c   : > { %1116 = vmatmul.f32.vlgmr.msrb.gmra.mxu3 %v1077_v10 }
 0x27f   : > { %1017 = vmatmul.f32.vlgmr.msrb.gmra.mxu0 %v891_v1  ;;  %1047 = vmatmul.f32.gmra.mxu1 %v899_v3 }
 0x281   : > { %1090 = vmatmul.f32.gmra.mxu2 %v1089_v32 }
 0x284   : > { %1120 = vmatmul.f32.gmra.mxu3 %v1085_v24 }
 0x287   : > { %1021 = vmatmul.f32.gmra.mxu0 %v899_v3  ;;  %1173 = vmatmul.f32.vlgmr.msra.gmra.mxu1 %v1079_v23 }
 0x289   : > { %1203 = vmatmul.f32.vlgmr.msra.gmra.mxu2 %v1077_v10 }
 0x28c   : > { %1229 = vmatmul.f32.vlgmr.msra.gmra.mxu3 %v1077_v10 }
 0x28f   : > { %1144 = vmatmul.f32.vlgmr.msra.gmra.mxu0 %v1078_v63  ;;  %1179 = vmatmul.f32.gmra.mxu1 %v1087_v30 }
 0x291   : > { %1207 = vmatmul.f32.gmra.mxu2 %v1085_v24 }
 0x294   : > { %1233 = vmatmul.f32.gmra.mxu3 %v1085_v24 }
 0x297   : > { %1149 = vmatmul.f32.gmra.mxu0 %v1086_v27 }
 0x2e4   : > { %v931_v34 = vpop.f32.mrf.mxu1 }
 0x2ec   : > { %v897_v33 = vpop.f32.mrf.mxu0  ;;  %v959_v35 = vpop.f32.mrf.mxu2 }
 0x2ed   : > { %v932_v38 = vadd.f32 %v931_v34, %v897_v33  ;;  %v935_v39 = vpop.f32.mrf.mxu1 }
 0x2ee   : > { %v988_v36 = vpop.f32.mrf.mxu3 }
 0x2ef   : > { %v960_v42 = vadd.f32 %v959_v35, %v932_v38 }
 0x2f1   : > { %v989_v44 = vadd.f32 %v988_v36, %v960_v42 }
 0x2f4   : > { %v905_v37 = vpop.f32.mrf.mxu0  ;;  %v964_v40 = vpop.f32.mrf.mxu2 }
 0x2f5   : > { %v936_v45 = vadd.f32 %v935_v39, %v905_v37  ;;  %v1044_v46 = vpop.f32.mrf.mxu1 }
 0x2f7   : > { %v994_v41 = vpop.f32.mrf.mxu3  ;;  %v965_v50 = vadd.f32 %v964_v40, %v936_v45 }
 0x2f9   : > { %v995_v53 = vadd.f32 %v994_v41, %v965_v50 }
 0x2fc   : > { %v1018_v43 = vpop.f32.mrf.mxu0  ;;  %v1083_v47 = vpop.f32.mrf.mxu2 }
 0x2fd   : > { %v1019_v49 = vadd.f32 %v1018_v43, %v989_v44  ;;  %v1048_v54 = vpop.f32.mrf.mxu1 }
 0x2ff   : > { %v1117_v48 = vpop.f32.mrf.mxu3  ;;  %v1045_v51 = vadd.f32 %v1044_v46, %v1019_v49 }
 0x301   : > { %v1084_v55 = vadd.f32 %v1083_v47, %v1045_v51 }
 0x303   : > { %v1118_v59 = vadd.f32 %v1117_v48, %v1084_v55 }
 0x304   : > { %v1022_v52 = vpop.f32.mrf.mxu0  ;;  %v1091_v56 = vpop.f32.mrf.mxu2 }
 0x305   : > { %v1023_v58 = vadd.f32 %v1022_v52, %v995_v53  ;;  %v1174_v0 = vpop.f32.mrf.mxu1 }
 0x307   : > { %v1121_v57 = vpop.f32.mrf.mxu3  ;;  %v1049_v60 = vadd.f32 %v1048_v54, %v1023_v58 }
 0x309   : > { %v1092_v2 = vadd.f32 %v1091_v56, %v1049_v60 }
 0x30b   : > { %v1122_v8 = vadd.f32 %v1121_v57, %v1092_v2 }
 0x30c   : > { %v1145_v61 = vpop.f32.mrf.mxu0  ;;  %v1204_v5 = vpop.f32.mrf.mxu2 }
 0x30d   : > { %v1146_v62 = vadd.f32 %v1145_v61, %v1118_v59  ;;  %v1180_v14 = vpop.f32.mrf.mxu1 }
 0x30f   : > { %v1230_v1 = vpop.f32.mrf.mxu3  ;;  %v1175_v3 = vadd.f32 %v1174_v0, %v1146_v62 }
 0x311   : > { %v1205_v4 = vadd.f32 %v1204_v5, %v1175_v3 }
 0x313   : > { %v1231_v9 = vadd.f32 %v1230_v1, %v1205_v4 }
 0x314   : > { %v1150_v10 = vpop.f32.mrf.mxu0  ;;  %v1208_v16 = vpop.f32.mrf.mxu2 }
 0x315   : > { %v1241_v11 = vadd.f32 %v1465_v6, %v1231_v9  ;;  %v1151_v13 = vadd.f32 %v1150_v10, %v1122_v8 }
 0x317   : > { %v1243_v20 = vmax.f32 %v1241_v11, 0.0  ;;  %v1181_v63 = vadd.f32 %v1180_v14, %v1151_v13  ;;  %v1234_v7 = vpop.f32.mrf.mxu3 }
 0x319   : > { %1245 = vst [vmem:[%s1576_s7] sm:$0xff] %v1243_v20  ;;  %v1209_v12 = vadd.f32 %v1208_v16, %v1181_v63 }
 0x31b   : > { %v1235_v15 = vadd.f32 %v1234_v7, %v1209_v12 }
 0x31d   : > { %v1242_v17 = vadd.f32 %v1465_v6, %v1235_v15 }
 0x31f   : > { %v1244_v18 = vmax.f32 %v1242_v17, 0.0 }
 0x321   : > { %1246 = vst [vmem:[%s1576_s7 + $0x8] sm:$0xff] %v1244_v18 }
 0x322 PF: > { %s16_s23 = sadd.s32 1, %s1500_s23   ;;  %s1753_s21 = smov %s1496_s22 }
 0x323   : > { %p13_p6 = scmp.ge.s32.totalorder %s16_s23, 4   ;;  %s1754_s22 = smov %s1756_s24 }
 0x325   :  { %15 = sbr.rel (!%p13_p6) target bundleno = 2 (0x2), region = 99 }

</bundles_post_ra>
